<compile_context>
chip_gen: v5e
topology: v5e:2x2
jax: 0.10.0
libtpu: 0.0.40
codegen_flags: <defaults>
</compile_context>

<pallas_src>
import jax
import jax.numpy as jnp
from jax import lax
from jax.experimental import pallas as pl
from jax.experimental.pallas import tpu as pltpu


def sae_kernel(x_ref, w_enc_ref, b_enc_ref, w_dec_ref, feat_ref, recon_ref, acc_ref):
    """One (batch-tile i, hidden-tile j) grid step.

    x_ref:     (tb, D)  activations
    w_enc_ref: (th, D)  encoder.weight rows for this hidden tile (torch layout)
    b_enc_ref: (1, th)  encoder bias slice
    w_dec_ref: (D, th)  decoder.weight columns for this hidden tile (torch layout)
    feat_ref:  (tb, th) ReLU features for this (i, j) tile
    recon_ref: (tb, D)  reconstruction, resident across j (written at last j)
    acc_ref:   (tb, D)  f32 accumulator scratch
    """
    j = pl.program_id(1)

    @pl.when(j == 0)
    def _():
        acc_ref[...] = jnp.zeros_like(acc_ref)

    # pre = x @ encoder.weight.T  -- contract D (x dim 1) against D (w_enc dim 1),
    # so no host-side transpose of the weight is needed.
    pre = lax.dot_general(
        x_ref[...], w_enc_ref[...],
        dimension_numbers=(((1,), (1,)), ((), ())),
        preferred_element_type=jnp.float32)
    pre = pre + b_enc_ref[...].astype(jnp.float32)   # (1, th) broadcast over batch
    feat_f32 = jnp.maximum(pre, 0.0)                 # ReLU epilogue kept in f32 (v5e-safe)
    feat = feat_f32.astype(feat_ref.dtype)
    feat_ref[...] = feat

    # recon += feat @ decoder.weight.T  -- contract H (feat dim 1) against H (w_dec dim 1).
    # Decoder consumes the stored (cast) features, matching the torch module exactly.
    acc_ref[...] += lax.dot_general(
        feat, w_dec_ref[...],
        dimension_numbers=(((1,), (1,)), ((), ())),
        preferred_element_type=jnp.float32)

    @pl.when(j == pl.num_programs(1) - 1)
    def _():
        recon_ref[...] = acc_ref[...].astype(recon_ref.dtype)


def _pick_tile(dim, want, align):
    """Largest tile <= want that divides dim and is a multiple of align.
    Falls back to the full dim (always a legal block shape)."""
    if dim <= want:
        return dim
    t = (want // align) * align
    while t >= align:
        if dim % t == 0:
            return t
        t -= align
    return dim


def sparse_autoencoder_forward(x, w_enc, b_enc, w_dec, *, block_b=None, block_h=None):
    """Matches torch:
         features       = ReLU(x @ w_enc.T + b_enc)
         reconstruction = features @ w_dec.T
       w_enc: (hidden, input_dim)   torch Linear(input_dim, hidden).weight
       b_enc: (hidden,)
       w_dec: (input_dim, hidden)   torch Linear(hidden, input_dim, bias=False).weight
    """
    B, D = x.shape
    H, D2 = w_enc.shape
    assert D2 == D and w_dec.shape == (D, H) and b_enc.shape == (H,)

    # Batch tile multiple of 8 (sublane), hidden tile multiple of 128 (lane).
    # TODO(synk): for production SAE shapes on v7x, halve these defaults (64 MiB VMEM/TC).
    tb = block_b if block_b is not None else _pick_tile(B, 256, 8)
    th = block_h if block_h is not None else _pick_tile(H, 512, 128)
    assert B % tb == 0 and H % th == 0

    b2d = b_enc.reshape(1, H)
    grid = (B // tb, H // th)

    # Scoped-VMEM budget derived from the tile set (double-buffered ins/outs + f32 acc).
    itemsize = jnp.dtype(x.dtype).itemsize
    est = (2 * (tb * D + th * D + th + D * th + tb * th + tb * D) * itemsize
           + tb * D * 4)
    vmem_limit = int(min(max(2 * est, 32 * 1024 * 1024), 100 * 1024 * 1024))

    feat, recon = pl.pallas_call(
        sae_kernel,
        out_shape=(jax.ShapeDtypeStruct((B, H), x.dtype),
                   jax.ShapeDtypeStruct((B, D), x.dtype)),
        grid_spec=pltpu.PrefetchScalarGridSpec(
            num_scalar_prefetch=0,
            grid=grid,
            in_specs=[
                pl.BlockSpec((tb, D), lambda i, j: (i, 0)),   # x: batch tile, full D
                pl.BlockSpec((th, D), lambda i, j: (j, 0)),   # encoder.weight rows
                pl.BlockSpec((1, th), lambda i, j: (0, j)),   # encoder bias slice
                pl.BlockSpec((D, th), lambda i, j: (0, j)),   # decoder.weight cols
            ],
            out_specs=(
                pl.BlockSpec((tb, th), lambda i, j: (i, j)),  # features
                pl.BlockSpec((tb, D), lambda i, j: (i, 0)),   # reconstruction (resident over j)
            ),
            scratch_shapes=[pltpu.VMEM((tb, D), jnp.float32)],
        ),
        compiler_params=pltpu.CompilerParams(
            dimension_semantics=("parallel", "arbitrary"),
            vmem_limit_bytes=vmem_limit,
        ),
    )(x, w_enc, b2d, w_dec)
    return feat, recon


if __name__ == "__main__":
    # Small shapes, but large enough to exercise real (2 x 2) tiling.
    batch, input_dim, hidden_dim = 16, 128, 256

    key = jax.random.PRNGKey(0)
    k_x, k_we, k_be, k_wd = jax.random.split(key, 4)

    x = jax.random.normal(k_x, (batch, input_dim), dtype=jnp.float32)
    # Same shapes as the torch Linear weights (no transposes anywhere on the host path).
    w_enc = jax.random.normal(k_we, (hidden_dim, input_dim), dtype=jnp.float32) * 0.1
    b_enc = jax.random.normal(k_be, (hidden_dim,), dtype=jnp.float32) * 0.01
    w_dec = jax.random.normal(k_wd, (input_dim, hidden_dim), dtype=jnp.float32) * 0.1

    feat, recon = jax.block_until_ready(
        sparse_autoencoder_forward(x, w_enc, b_enc, w_dec, block_b=8, block_h=128))

    # Reference (plain JAX) sanity check.
    feat_ref = jnp.maximum(x @ w_enc.T + b_enc, 0.0)
    recon_ref = feat_ref @ w_dec.T
    assert feat.shape == (batch, hidden_dim)
    assert recon.shape == (batch, input_dim)
    assert jnp.allclose(feat, feat_ref, atol=1e-5, rtol=1e-5)
    assert jnp.allclose(recon, recon_ref, atol=1e-5, rtol=1e-5)

    print("KERNEL_OK")
</pallas_src>

<mosaic_0001>
module attributes {stable_mosaic.version = 11 : i64} {
  func.func @sae_kernel(%arg0: i32, %arg1: i32, %arg2: memref<8x128xf32, #tpu.memory_space<vmem>>, %arg3: memref<128x128xf32, #tpu.memory_space<vmem>>, %arg4: memref<1x128xf32, #tpu.memory_space<vmem>>, %arg5: memref<128x128xf32, #tpu.memory_space<vmem>>, %arg6: memref<8x128xf32, #tpu.memory_space<vmem>>, %arg7: memref<8x128xf32, #tpu.memory_space<vmem>>, %arg8: memref<8x128xf32, #tpu.memory_space<vmem>>) attributes {dimension_semantics = [#tpu.dimension_semantics<parallel>, #tpu.dimension_semantics<arbitrary>], iteration_bounds = array<i64: 2, 2>, scalar_prefetch = 0 : i64, scratch_operands = 1 : i64, tpu.core_type = #tpu.core_type<tc>, window_params = [{transform_indices = @transform_0, window_bounds = array<i64: 8, 128>}, {transform_indices = @transform_1, window_bounds = array<i64: 128, 128>}, {transform_indices = @transform_2, window_bounds = array<i64: 1, 128>}, {transform_indices = @transform_3, window_bounds = array<i64: 128, 128>}, {transform_indices = @transform_4, window_bounds = array<i64: 8, 128>}, {transform_indices = @transform_5, window_bounds = array<i64: 8, 128>}]} {
    %c0_i32 = arith.constant 0 : i32
    %0 = arith.cmpi eq, %arg1, %c0_i32 : i32
    %1 = arith.extui %0 : i1 to i32
    %c0_i32_0 = arith.constant 0 : i32
    %2 = arith.cmpi ne, %1, %c0_i32_0 : i32
    scf.if %2 {
      %cst_17 = arith.constant 0.000000e+00 : f32
      %20 = vector.broadcast %cst_17 : f32 to vector<8x128xf32>
      %c0_18 = arith.constant 0 : index
      %c0_19 = arith.constant 0 : index
      %21 = vector.load %arg8[%c0_18, %c0_19] : memref<8x128xf32, #tpu.memory_space<vmem>>, vector<8x128xf32>
      tpu.vector_store %arg8[%c0_18, %c0_19], %20 {strides = array<i32>} : memref<8x128xf32, #tpu.memory_space<vmem>>, vector<8x128xf32>,
    } else {
    }
    %c0 = arith.constant 0 : index
    %c0_1 = arith.constant 0 : index
    %3 = vector.load %arg2[%c0, %c0_1] : memref<8x128xf32, #tpu.memory_space<vmem>>, vector<8x128xf32>
    %c0_2 = arith.constant 0 : index
    %c0_3 = arith.constant 0 : index
    %4 = vector.load %arg3[%c0_2, %c0_3] : memref<128x128xf32, #tpu.memory_space<vmem>>, vector<128x128xf32>
    %cst = arith.constant dense<0.000000e+00> : vector<8x128xf32>
    %5 = tpu.matmul %3, %4, %cst {dimension_numbers = #tpu.dot_dimension_numbers<[1], [1], [0], [0], [0, 0, 1, 0], [], []>} : vector<8x128xf32>, vector<128x128xf32>, vector<8x128xf32> -> vector<8x128xf32>
    %c0_4 = arith.constant 0 : index
    %c0_5 = arith.constant 0 : index
    %6 = vector.load %arg4[%c0_4, %c0_5] : memref<1x128xf32, #tpu.memory_space<vmem>>, vector<1x128xf32>
    %7 = vector.broadcast %6 : vector<1x128xf32> to vector<8x128xf32>
    %8 = arith.addf %5, %7 : vector<8x128xf32>
    %cst_6 = arith.constant 0.000000e+00 : f32
    %9 = vector.broadcast %cst_6 : f32 to vector<8x128xf32>
    %10 = arith.maximumf %8, %9 : vector<8x128xf32>
    %c0_7 = arith.constant 0 : index
    %c0_8 = arith.constant 0 : index
    %11 = vector.load %arg6[%c0_7, %c0_8] : memref<8x128xf32, #tpu.memory_space<vmem>>, vector<8x128xf32>
    tpu.vector_store %arg6[%c0_7, %c0_8], %10 {strides = array<i32>} : memref<8x128xf32, #tpu.memory_space<vmem>>, vector<8x128xf32>,
    %c0_9 = arith.constant 0 : index
    %c0_10 = arith.constant 0 : index
    %12 = vector.load %arg8[%c0_9, %c0_10] : memref<8x128xf32, #tpu.memory_space<vmem>>, vector<8x128xf32>
    %c0_11 = arith.constant 0 : index
    %c0_12 = arith.constant 0 : index
    %13 = vector.load %arg5[%c0_11, %c0_12] : memref<128x128xf32, #tpu.memory_space<vmem>>, vector<128x128xf32>
    %cst_13 = arith.constant dense<0.000000e+00> : vector<8x128xf32>
    %14 = tpu.matmul %10, %13, %cst_13 {dimension_numbers = #tpu.dot_dimension_numbers<[1], [1], [0], [0], [0, 0, 1, 0], [], []>} : vector<8x128xf32>, vector<128x128xf32>, vector<8x128xf32> -> vector<8x128xf32>
    %15 = arith.addf %12, %14 : vector<8x128xf32>
    %c0_14 = arith.constant 0 : index
    %c0_15 = arith.constant 0 : index
    %16 = vector.load %arg8[%c0_14, %c0_15] : memref<8x128xf32, #tpu.memory_space<vmem>>, vector<8x128xf32>
    tpu.vector_store %arg8[%c0_14, %c0_15], %15 {strides = array<i32>} : memref<8x128xf32, #tpu.memory_space<vmem>>, vector<8x128xf32>,
    %c1_i32 = arith.constant 1 : i32
    %17 = arith.cmpi eq, %arg1, %c1_i32 : i32
    %18 = arith.extui %17 : i1 to i32
    %c0_i32_16 = arith.constant 0 : i32
    %19 = arith.cmpi ne, %18, %c0_i32_16 : i32
    scf.if %19 {
      %c0_17 = arith.constant 0 : index
      %c0_18 = arith.constant 0 : index
      %20 = vector.load %arg8[%c0_17, %c0_18] : memref<8x128xf32, #tpu.memory_space<vmem>>, vector<8x128xf32>
      %c0_19 = arith.constant 0 : index
      %c0_20 = arith.constant 0 : index
      %21 = vector.load %arg7[%c0_19, %c0_20] : memref<8x128xf32, #tpu.memory_space<vmem>>, vector<8x128xf32>
      tpu.vector_store %arg7[%c0_19, %c0_20], %20 {strides = array<i32>} : memref<8x128xf32, #tpu.memory_space<vmem>>, vector<8x128xf32>,
    } else {
    }
    return
  }
  func.func @transform_0(%arg0: i32, %arg1: i32) -> (i32, i32) {
    %c0_i32 = arith.constant 0 : i32
    %c0_i32_0 = arith.constant 0 : i32
    return %arg0, %c0_i32 : i32, i32
  }
  func.func @transform_1(%arg0: i32, %arg1: i32) -> (i32, i32) {
    %c0_i32 = arith.constant 0 : i32
    %c0_i32_0 = arith.constant 0 : i32
    return %arg1, %c0_i32 : i32, i32
  }
  func.func @transform_2(%arg0: i32, %arg1: i32) -> (i32, i32) {
    %c0_i32 = arith.constant 0 : i32
    %c0_i32_0 = arith.constant 0 : i32
    return %c0_i32, %arg1 : i32, i32
  }
  func.func @transform_3(%arg0: i32, %arg1: i32) -> (i32, i32) {
    %c0_i32 = arith.constant 0 : i32
    %c0_i32_0 = arith.constant 0 : i32
    return %c0_i32, %arg1 : i32, i32
  }
  func.func @transform_4(%arg0: i32, %arg1: i32) -> (i32, i32) {
    %c0_i32 = arith.constant 0 : i32
    return %arg0, %arg1 : i32, i32
  }
  func.func @transform_5(%arg0: i32, %arg1: i32) -> (i32, i32) {
    %c0_i32 = arith.constant 0 : i32
    %c0_i32_0 = arith.constant 0 : i32
    return %arg0, %c0_i32 : i32, i32
  }
}

</mosaic_0001>

<bundles_post_ra>
// kernel: tpu_custom_call.1
= control target key start
LH: loop header
LB: loop body
LE: loop exit
PB: predicated region body
PF: predicated region fallthrough
CT: control target
= control target key end

     0   :  { %s1600_s0 = inlined_call_operand.hbm [shape: f32[16,128], index: 0, kind: input, shape index: {}]   ;;  %s1601_s1 = inlined_call_operand.hbm [shape: f32[256,128], index: 1, kind: input, shape index: {}]   ;;  %s1602_s2 = inlined_call_operand.hbm [shape: f32[1,256], index: 2, kind: input, shape index: {}]   ;;  %s1603_s3 = inlined_call_operand.hbm [shape: f32[128,256], index: 3, kind: input, shape index: {}]   ;;  %s1604_s4 = inlined_call_operand.hbm [shape: f32[16,256], index: 4, kind: output, shape index: {0}]   ;;  %s1605_s5 = inlined_call_operand.hbm [shape: f32[16,128], index: 5, kind: output, shape index: {1}]  }
   0x1   :  { %1625 = sst [smem:[#allocation36_spill]] %s1600_s0 }
   0x2   :  { %1626 = sst [smem:[#allocation37_spill]] %s1601_s1 }
   0x3   :  { %1627 = sst [smem:[#allocation38_spill]] %s1602_s2 }
   0x4   :  { %1628 = sst [smem:[#allocation39_spill]] %s1604_s4 }
   0x5   :  { %1629 = sst [smem:[#allocation40_spill]] %s1605_s5 }
   0x6   :  { %11 = vsyncpa [#allocation4], 0 }
   0x7   :  { %13 = vsyncpa [#allocation4 + $0x1], 0 }
   0x8   :  { %14 = vsyncpa [#allocation7], 0 }
   0x9   :  { %16 = vsyncpa [#allocation7 + $0x1], 0 }
   0xa   :  { %17 = vsyncpa [#allocation10], 0 }
   0xb   :  { %19 = vsyncpa [#allocation10 + $0x1], 0 }
   0xc   :  { %20 = vsyncpa [#allocation5], 0 }
   0xd   :  { %22 = vsyncpa [#allocation5 + $0x1], 0 }
   0xe   :  { %23 = vsyncpa [#allocation13], 0 }
   0xf   :  { %25 = vsyncpa [#allocation13 + $0x1], 0  ;;  %s1211_s18 = smov 0   ;;  %s1213_s19 = smov 0  }
  0x10   :  { %s1215_s20 = smov 0   ;;  %s1217_s21 = smov 0  }
  0x11   :  { %s1219_s22 = smov 0   ;;  %s1221_s23 = smov 0  }
  0x12   :  { %s1223_s24 = smov 0   ;;  %s1225_s25 = smov 0  }
  0x13   :  { %s1227_s26 = smov 0   ;;  %s1229_s27 = smov 0  }
  0x14   :  { %s1231_s28 = smov 0   ;;  %s1233_s29 = smov 0  }
  0x15   :  { %s1235_s30 = smov 0   ;;  %s1237_s6 = smov 0  }
  0x16 LB: > { %1630 = sst [smem:[#allocation19_spill]] %s1123_s18  ;;  %p58_p0 = scmp.eq.s32.totalorder %s1175_s6, 0  ;;  %s1175_s6 = sphi %s1237_s6, %s31_s6   ;;  %s1171_s30 = sphi %s1235_s30, %s1686_s30   ;;  %s1167_s29 = sphi %s1233_s29, %s1693_s29   ;;  %s1163_s28 = sphi %s1231_s28, %s1692_s28   ;;  %s1159_s27 = sphi %s1229_s27, %s1691_s27   ;;  %s1155_s26 = sphi %s1227_s26, %s1683_s26   ;;  %s1151_s25 = sphi %s1225_s25, %s1690_s25   ;;  %s1147_s24 = sphi %s1223_s24, %s1689_s24   ;;  %s1143_s23 = sphi %s1221_s23, %s1681_s23   ;;  %s1139_s22 = sphi %s1219_s22, %s1680_s22   ;;  %s1135_s21 = sphi %s1217_s21, %s1679_s21   ;;  %s1131_s20 = sphi %s1215_s20, %s1678_s20   ;;  %s1127_s19 = sphi %s1213_s19, %s1688_s19   ;;  %s1123_s18 = sphi %s1211_s18, %s1687_s18  }
  0x17   : > { %1631 = sst [smem:[#allocation20_spill]] %s1131_s20  ;;  %p83_p1 = scmp.ne.s32.totalorder %s1143_s23, %s1139_s22 }
  0x18   : > { %1632 = sst [smem:[#allocation21_spill]] %s1139_s22  ;;  %p1613_p2 = scmp.lt.s32.totalorder %s1175_s6, 4 }
  0x19   : > { %1633 = sst [smem:[#allocation22_spill]] %s1143_s23  ;;  %s238_s8 = sand.u32 1, %s1175_s6  }
  0x1a   : > { %1634 = sst [smem:[#allocation23_spill]] %s1147_s24  ;;  %p85_p3 = por %p83_p1, %p58_p0 }
  0x1b   : > { %1635 = sst [smem:[#allocation24_spill]] %s1155_s26  ;;  %s1290_s9 = sand.u32 1, %s1143_s23  }
  0x1c   : > { %1636 = sst [smem:[#allocation25_spill]] %s1159_s27  ;;  %s717_s10 = sshll.u32 %s1167_s29, 7 }
  0x1d   : > { %1637 = sst [smem:[#allocation26_spill]] %s1163_s28  ;;  %s697_s11 = sshll.u32 %s1290_s9, 7 }
  0x1e   : > { %1638 = sst [smem:[#allocation27_spill]] %s1171_s30  ;;  %s242_s16 = scalar_lea.vmem [#allocation6], %s697_s11 }
  0x1f   : > { %s1639_s1 = sld [smem:[#allocation37_spill]]  ;;  %s250_s17 = sshll.u32 %s242_s16, 4  ;;  %s251_s17 = int_to_ptr.vmem [resolvable:$true] %s250_s17 }
  0x20   : > { %p1299_p4 = pnand %p1613_p2, %p85_p3  ;;  %s1303_s5 = scalar_lea.sflag [#allocation7], %s238_s8 }
  0x21   : > { %s1608_s12 = smov 8   ;;  %s281_s13 = scalar_lea.vmem [#allocation9], %s697_s11 }
  0x22   : > { %p702_p5 = scmp.ge.s32.totalorder %s1175_s6, 1  ;;  %p296_p6 = scmp.lt.s32.totalorder %s1175_s6, 5 }
  0x23   : > { %s1320_s16 = sadd.s32 4294967295, %s1175_s6   ;;  %p57_p9 = scmp.ne.s32.totalorder %s1155_s26, %s1151_s25 }
  0x24   : > { %p1315_p7 = pnand %p702_p5, %p296_p6  ;;  %p63_p11 = scmp.ne.s32.totalorder %s1151_s25, %s1147_s24 }
  0x25   : > { %s247_s14 = scalar_lea.hbm %s1639_s1, %s717_s10  ;;  %s1607_s10 = smov 128  }
  0x26   : > { %s248_s15 = sshll.u32 %s247_s14, 4  ;;  %s288_s14 = sshll.u32 %s281_s13, 4  ;;  %s249_s15 = int_to_ptr.hbm [resolvable:$true] %s248_s15  ;;  %s1312_s14 = int_to_ptr.vmem [resolvable:$true] %s288_s14 }
  0x27   : > { %736 = dma.hbm_to_vmem [thread:$0]  (!%p1299_p4), %s249_s15, 2048, %s251_s17, %s1303_s5, %s1607_s10, %s1607_s10, %s1608_s12  }
  0x28   : > { %s40_s15 = sadd.s32 1, %s1167_s29  ;;  %s43_s17 = sadd.s32 1, %s1171_s30 }
  0x29   : > { %p41_p8 = scmp.ge.s32.totalorder %s40_s15, 2  ;;  %s50_s13 = sadd.s32 1, %s1155_s26 }
  0x2a   : > { %p1336_p10 = por %p58_p0, %p57_p9  ;;  %p64_p13 = scmp.eq.s32.totalorder %s1320_s16, 0 }
  0x2b   : > { %s1695_s15 = smov (%p41_p8, %s40_s15), 0  ;;  %s1697_s17 = smov (!%p41_p8, %s43_s17), %s1171_s30 }
  0x2c   : > { %1642 = sst [smem:[#allocation28_spill]] %s1695_s15  ;;  %p45_p12 = scmp.ge.s32.totalorder %s1697_s17, 2 }
  0x2d   : > { %s73_s12 = ssub.s32 %s1167_s29, %s1695_s15  ;;  %p89_p1 = scmp.ne.s32.totalorder %s1139_s22, %s1135_s21 }
  0x2e   : > { %s1699_s17 = smov (%p45_p12, %s1697_s17), 0  ;;  %p1352_p0 = por %p64_p13, %p63_p11 }
  0x2f   : > { %1644 = sst [smem:[#allocation29_spill]] %s1699_s17  ;;  %p74_p3 = scmp.eq.s32.totalorder %s73_s12, 0 }
  0x30   : > { %s1645_s11 = scalar_select %p1352_p0, 1, 0 }
  0x31   : > { %s47_s1 = ssub.s32 %s1171_s30, %s1699_s17  ;;  %p1358_p5 = por %p89_p1, %p64_p13 }
  0x32   : > { %1646 = sst [smem:[#allocation30_spill]] %s1645_s11  ;;  %p48_p6 = scmp.eq.s32.totalorder %s47_s1, 0 }
  0x33   : > { %s153_s21 = sor.u32 %s73_s12, %s47_s1  ;;  %s1648_s4 = sadd.s32 1, %s1143_s23 }
  0x34   : > { %s1365_s28 = scalar_select %p74_p3, %s1143_s23, %s1648_s4  }
  0x35   : > { %s1368_s27 = scalar_select %p48_p6, %s1155_s26, %s50_s13  }
  0x36   : > { %1649 = sst [smem:[#allocation31_spill]] %s1365_s28  ;;  %p154_p8 = scmp.eq.s32.totalorder %s153_s21, 0 }
  0x37   : > { %1650 = sst [smem:[#allocation32_spill]] %s1368_s27  ;;  %s156_s22 = sadd.s32 1, %s1131_s20 }
  0x38   : > { %p166_p12 = scmp.ne.s32.totalorder %s1131_s20, %s1127_s19  ;;  %p167_p2 = scmp.eq.s32.totalorder %s1320_s16, 3 }
  0x39   : > { %s1375_s11 = scalar_select %p154_p8, %s1131_s20, %s156_s22  }
  0x3a   : > { %p1377_p13 = por %p167_p2, %p166_p12  ;;  %p172_p1 = scmp.ne.s32.totalorder %s1127_s19, %s1123_s18 }
  0x3b   : > { %1651 = sst [smem:[#allocation33_spill]] %s1375_s11  ;;  %s1653_s1 = sadd.s32 4294967294, %s1175_s6  }
  0x3c   : > { %p173_p3 = scmp.eq.s32.totalorder %s1653_s1, 3  ;;  %p1388_p6 = por %p167_p2, %p57_p9 }
  0x3d   : > { %s219_s12 = sand.u32 1, %s1155_s26   ;;  %s696_s13 = sshll.u32 %s1171_s30, 3 }
  0x3e   : > { %p1394_p8 = por %p173_p3, %p172_p1  ;;  %p1401_p12 = por %p173_p3, %p63_p11 }
  0x3f   : > { %s695_s27 = sshll.u32 %s219_s12, 3  ;;  %s1659_s0 = sld [smem:[#allocation36_spill]] }
  0x40   : > { %s1655_s22 = scalar_select %p1394_p8, 1, 0 }
  0x41   : > { %s1657_s21 = scalar_select %p1401_p12, 1, 0 }
  0x42   : > { %1656 = sst [smem:[#allocation34_spill]] %s1655_s22  ;;  %s223_s26 = scalar_lea.vmem [#allocation3], %s695_s27 }
  0x43   : > { %1658 = sst [smem:[#allocation35_spill]] %s1657_s21  ;;  %s231_s30 = sshll.u32 %s223_s26, 4  ;;  %s232_s30 = int_to_ptr.vmem [resolvable:$true] %s231_s30 }
  0x44   : > { %p1660_p2 = scmp.lt.s32.totalorder %s1175_s6, 4  ;;  %s1661_s2 = sld [smem:[#allocation38_spill]] }
  0x45   : > { %s227_s1 = scalar_lea.hbm %s1659_s0, %s696_s13  ;;  %s263_s23 = scalar_lea.vmem [#allocation8], %s1290_s9 }
  0x46   : > { %s229_s11 = sshll.u32 %s227_s1, 4  ;;  %p731_p9 = pnand %p1660_p2, %p1336_p10  ;;  %s230_s11 = int_to_ptr.hbm [resolvable:$true] %s229_s11 }
  0x47   : > { %s270_s28 = sshll.u32 %s263_s23, 4  ;;  %s220_s13 = scalar_lea.sflag [#allocation4], %s219_s12  ;;  %s271_s28 = int_to_ptr.vmem [resolvable:$true] %s270_s28 }
  0x48   : > { %733 = dma.hbm_to_vmem [thread:$0]  (!%p731_p9), %s230_s11, 128, %s232_s30, %s220_s13  }
  0x49   : > { %s701_s26 = sshll.u32 %s1167_s29, 3  ;;  %s278_s20 = scalar_lea.sflag [#allocation10], %s1290_s9 }
  0x4a   : > { %s266_s21 = scalar_lea.hbm %s1661_s2, %s1167_s29  ;;  %s285_s1 = scalar_lea.hbm %s1603_s3, %s701_s26 }
  0x4b   : > { %s268_s22 = sshll.u32 %s266_s21, 4  ;;  %s286_s0 = sshll.u32 %s285_s1, 4  ;;  %s269_s22 = int_to_ptr.hbm [resolvable:$true] %s268_s22  ;;  %s287_s0 = int_to_ptr.hbm [resolvable:$true] %s286_s0 }
  0x4c   : > { %739 = dma.hbm_to_vmem [thread:$0]  (!%p1299_p4), %s269_s22, 16, %s271_s28, %s1303_s5  }
  0x4d   : > { %s1179_s24 = smov 256   ;;  %s1662_s2 = smov 8  }
  0x4e   : > { %s1663_s18 = smov 128   ;;  %300 = sbr.rel (%p1315_p7) target bundleno = 480 (0x1e0), region = 36 }
  0x4f   : > { %742 = dma.hbm_to_vmem [thread:$0]  (!%p1299_p4), %s287_s0, 2048, %s1312_s14, %s278_s20, %s1179_s24, %s1663_s18, %s1662_s2  }
  0x50   : > { %s1433_s11 = sand.u32 (!%p1315_p7), 1, %s1151_s25  }
  0x51   : > { %s703_s5 = sshll.u32 (!%p1315_p7), %s1433_s11, 3  ;;  %s303_s12 = scalar_lea.sflag (!%p1315_p7), [#allocation4], %s1433_s11 }
  0x52   : > { %s1437_s22 = scalar_lea.vmem (!%p1315_p7), [#allocation3], %s703_s5 }
  0x53   : > { %1102 = dma.done.wait (%p1352_p0), %s303_s12, 128  }
  0x54   : > { %1104 = vsyncadd (%p1352_p0), %s303_s12, 4294967168  ;;  %s1665_s0 = sld [smem:[#allocation21_spill]]  ;;  %s312_s2 = sand.u32 1, %s1320_s16  }
  0x55   : > { %s313_s9 = scalar_lea.sflag [#allocation7], %s312_s2 }
  0x5a   : > { %s1445_s18 = sand.u32 1, %s1665_s0  }
  0x5b   : > { %s704_s7 = sshll.u32 %s1445_s18, 7 }
  0x5c   : > { %s1448_s14 = scalar_lea.vmem [#allocation6], %s704_s7 }
  0x5d   : > { %1106 = dma.done.wait (%p1358_p5), %s313_s9, 2064  }
  0x5e   : > { %1108 = vsyncadd (%p1358_p5), %s313_s9, 4294965232  ;;  %s325_s8 = scalar_lea.vmem [#allocation8], %s1445_s18  ;;  %s332_s21 = scalar_lea.sflag [#allocation10], %s1445_s18 }
  0x5f   : > { %s1456_s23 = scalar_lea.vmem [#allocation9], %s704_s7 }
  0x60   : > { %1110 = dma.done.wait (%p1358_p5), %s332_s21, 2048  }
  0x61   : > { %1112 = vsyncadd (%p1358_p5), %s332_s21, 4294965248  ;;  %s372_s16 = sand.u32 1, %s1127_s19   ;;  %s1468_s26 = scalar_lea.vmem [#allocation12], %s703_s5 }
  0x62   : > { %s1465_s28 = sshll.u32 %s372_s16, 3  ;;  %s1666_s27 = sld [smem:[#allocation25_spill]] }
  0x63   : > { %s374_s13 = scalar_lea.vmem [#allocation11], %s1465_s28 }
  0x68   : > { %p708_p4 = scmp.ne.s32.totalorder %s1666_s27, 0 }
  0x6a   : > { %386 = sbr.rel (%p708_p4) target bundleno = 113 (0x71), region = 56 }
  0x6f   : > { %v1180_v0 = vmov 0.0  }
  0x70   : > { %387 = vst [vmem:[#allocation2] sm:$0xff] %v1180_v0 }
  0x71 PF: > { %v404_v1 = vld [vmem:[%s1448_s14 + $0x78] sm:$0xff]  ;;  %v403_v2 = vld [vmem:[%s1448_s14 + $0x70] sm:$0xff]  ;;  %v402_v3 = vld [vmem:[%s1448_s14 + $0x68] sm:$0xff]  ;;  %s1667_s15 = sld [smem:[#allocation25_spill]] }
  0x72   : > { %409 = vmatpush.xpose.msra.mxu0 %v404_v1  ;;  %v401_v4 = vld [vmem:[%s1448_s14 + $0x60] sm:$0xff]  ;;  %v400_v5 = vld [vmem:[%s1448_s14 + $0x58] sm:$0xff]  ;;  %v399_v6 = vld [vmem:[%s1448_s14 + $0x50] sm:$0xff] }
  0x73   : > { %v398_v7 = vld [vmem:[%s1448_s14 + $0x48] sm:$0xff]  ;;  %v397_v8 = vld [vmem:[%s1448_s14 + $0x40] sm:$0xff]  ;;  %v396_v9 = vld [vmem:[%s1448_s14 + $0x38] sm:$0xff] }
  0x74   : > { %v447_v10 = vld [vmem:[%s1456_s23 + $0x78] sm:$0xff]  ;;  %v395_v11 = vld [vmem:[%s1448_s14 + $0x30] sm:$0xff]  ;;  %v394_v13 = vld [vmem:[%s1448_s14 + $0x28] sm:$0xff] }
  0x75   : > { %448 = vmatpush.xpose.msra.mxu1 %v447_v10  ;;  %v446_v12 = vld [vmem:[%s1456_s23 + $0x70] sm:$0xff]  ;;  %v445_v14 = vld [vmem:[%s1456_s23 + $0x68] sm:$0xff]  ;;  %v393_v15 = vld [vmem:[%s1448_s14 + $0x20] sm:$0xff] }
  0x76   : > { %410 = vmatpush.xpose.msra.mxu0 %v403_v2  ;;  %v444_v16 = vld [vmem:[%s1456_s23 + $0x60] sm:$0xff]  ;;  %v392_v17 = vld [vmem:[%s1448_s14 + $0x18] sm:$0xff]  ;;  %v391_v19 = vld [vmem:[%s1448_s14 + $0x10] sm:$0xff] }
  0x77   : > { %v443_v18 = vld [vmem:[%s1456_s23 + $0x58] sm:$0xff]  ;;  %v442_v20 = vld [vmem:[%s1456_s23 + $0x50] sm:$0xff]  ;;  %v390_v21 = vld [vmem:[%s1448_s14 + $0x8] sm:$0xff]  ;;  %p709_p7 = scmp.ne.s32.totalorder %s1667_s15, 1 }
  0x78   : > { %v441_v22 = vld [vmem:[%s1456_s23 + $0x48] sm:$0xff]  ;;  %v389_v23 = vld [vmem:[%s1448_s14] sm:$0xff]  ;;  %v438_v27 = vld [vmem:[%s1456_s23 + $0x30] sm:$0xff] }
  0x79   : > { %449 = vmatpush.xpose.msra.mxu1 %v446_v12  ;;  %v440_v24 = vld [vmem:[%s1456_s23 + $0x40] sm:$0xff]  ;;  %v388_v25 = vld [vmem:[%s1437_s22] sm:$0xff] }
  0x7a   : > { %411 = vmatpush.xpose.msra.mxu0 %v402_v3  ;;  %v439_v26 = vld [vmem:[%s1456_s23 + $0x38] sm:$0xff]  ;;  %v437_v28 = vld [vmem:[%s1456_s23 + $0x28] sm:$0xff]  ;;  %v436_v29 = vld [vmem:[%s1456_s23 + $0x20] sm:$0xff] }
  0x7b   : > { %v435_v30 = vld [vmem:[%s1456_s23 + $0x18] sm:$0xff]  ;;  %v434_v31 = vld [vmem:[%s1456_s23 + $0x10] sm:$0xff]  ;;  %v433_v32 = vld [vmem:[%s1456_s23 + $0x8] sm:$0xff] }
  0x7c   : > { %v432_v33 = vld [vmem:[%s1456_s23] sm:$0xff] }
  0x7d   : > { %450 = vmatpush.xpose.msra.mxu1 %v445_v14  ;;  %v868_v34 = vld [vmem:[%s325_s8] ss:$0 sm:$0xff] }
  0x7e   : > { %412 = vmatpush.xpose.msra.mxu0 %v401_v4  ;;  %v431_v38 = vld [vmem:[#allocation2] sm:$0xff] }
  0x81   : > { %451 = vmatpush.xpose.msra.mxu1 %v444_v16 }
  0x82   : > { %413 = vmatpush.xpose.msra.mxu0 %v400_v5 }
  0x85   : > { %452 = vmatpush.xpose.msra.mxu1 %v443_v18 }
  0x86   : > { %414 = vmatpush.xpose.msra.mxu0 %v399_v6 }
  0x89   : > { %453 = vmatpush.xpose.msra.mxu1 %v442_v20 }
  0x8a   : > { %415 = vmatpush.xpose.msra.mxu0 %v398_v7 }
  0x8d   : > { %454 = vmatpush.xpose.msra.mxu1 %v441_v22 }
  0x8e   : > { %416 = vmatpush.xpose.msra.mxu0 %v397_v8 }
  0x91   : > { %455 = vmatpush.xpose.msra.mxu1 %v440_v24 }
  0x92   : > { %417 = vmatpush.xpose.msra.mxu0 %v396_v9 }
  0x95   : > { %456 = vmatpush.xpose.msra.mxu1 %v439_v26 }
  0x96   : > { %418 = vmatpush.xpose.msra.mxu0 %v395_v11 }
  0x99   : > { %457 = vmatpush.xpose.msra.mxu1 %v438_v27 }
  0x9a   : > { %419 = vmatpush.xpose.msra.mxu0 %v394_v13 }
  0x9d   : > { %458 = vmatpush.xpose.msra.mxu1 %v437_v28 }
  0x9e   : > { %420 = vmatpush.xpose.msra.mxu0 %v393_v15 }
  0xa1   : > { %459 = vmatpush.xpose.msra.mxu1 %v436_v29 }
  0xa2   : > { %421 = vmatpush.xpose.msra.mxu0 %v392_v17 }
  0xa5   : > { %460 = vmatpush.xpose.msra.mxu1 %v435_v30 }
  0xa6   : > { %422 = vmatpush.xpose.msra.mxu0 %v391_v19 }
  0xa9   : > { %461 = vmatpush.xpose.msra.mxu1 %v434_v31 }
  0xaa   : > { %423 = vmatpush.xpose.msra.mxu0 %v390_v21 }
  0xad   : > { %462 = vmatpush.xpose.msra.mxu1 %v433_v32 }
  0xae   : > { %424 = vmatpush.xpose.msra.mxu0 %v389_v23 }
  0xb1   : > { %425 = vmatmul.f32.vlgmr.msra.gmra.mxu0 %v388_v25  ;;  %463 = vmatpush.xpose.msra.mxu1 %v432_v33 }
 0x12e   : > { %v426_v35 = vpop.f32.mrf.mxu0 }
 0x12f   : > { %v427_v36 = vadd.f32 %v868_v34, %v426_v35 }
 0x131   : > { %v429_v37 = vmax.f32 %v427_v36, 0.0 }
 0x133   : > { %430 = vst [vmem:[%s374_s13] sm:$0xff] %v429_v37  ;;  %464 = vmatmul.f32.vlgmr.msra.gmra.mxu1 %v429_v37 }
 0x1af   : > { %473 = sbr.rel (%p709_p7) target bundleno = 444 (0x1bc), region = 60 }
 0x1b0   : > { %v465_v39 = vpop.f32.mrf.mxu1 }
 0x1b1   : > { %v468_v40 = vadd.f32 %v465_v39, %v431_v38 }
 0x1b3   : > { %469 = vst [vmem:[#allocation2] sm:$0xff] %v468_v40 }
 0x1ba   : > { %v474_v41 = vld [vmem:[#allocation2] sm:$0xff] }
 0x1bb   : > { %475 = vst [vmem:[%s1468_s26] sm:$0xff] %v474_v41 }
 0x1bc PF: > { %s1668_s10 = sld [smem:[#allocation26_spill]]  ;;  %s496_s30 = sshll.u32 %s374_s13, 4  ;;  %s497_s30 = int_to_ptr.vmem [resolvable:$true] %s496_s30 }
 0x1bd   : > { %s1669_s1 = sld [smem:[#allocation25_spill]]  ;;  %s477_s23 = scalar_lea.sflag [#allocation5], %s372_s16 }
 0x1be   : > { %s1670_s0 = sld [smem:[#allocation39_spill]] }
 0x1bf   : > { %s1671_s8 = sld [smem:[#allocation40_spill]] }
 0x1c2   : > { %s712_s20 = sshll.u32 %s1668_s10, 1  ;;  %s714_s7 = sshll.u32 %s1668_s10, 3 }
 0x1c3   : > { %s492_s24 = sadd.s32 %s1669_s1, %s712_s20 }
 0x1c4   : > { %s713_s5 = sshll.u32 %s492_s24, 3  ;;  %s1009_s1 = scalar_lea.hbm %s1670_s0, 32 }
 0x1c5   : > { %s494_s2 = scalar_lea.hbm %s1670_s0, %s713_s5  ;;  %s508_s21 = scalar_lea.hbm %s1671_s8, %s714_s7 }
 0x1c6   : > { %s498_s18 = sshll.u32 %s494_s2, 4  ;;  %s499_s18 = int_to_ptr.hbm [resolvable:$true] %s498_s18 }
 0x1c7   : > { %s1003_s27 = sshra.s32 %s499_s18, 4  ;;  %s1004_s27 = int_to_ptr.hbm [resolvable:$true] %s1003_s27 }
 0x1c8   : > { %s1005_s15 = scalar_lea.hbm %s1004_s27, 8  ;;  %p1010_p5 = scmp.lt.s32.totalorder %s1004_s27, %s1670_s0 }
 0x1c9   : > { %p1006_p10 = scmp.ne.s32.totalorder %s1004_s27, %s1005_s15  ;;  %p1011_p1 = scmp.lt.s32.totalorder %s1009_s1, %s1005_s15 }
 0x1cb   : > { %p1007_p11 = pnand %p1006_p10, %p1377_p13  ;;  %p1012_p3 = por %p1011_p1, %p1010_p5 }
 0x1cd   : > { %p1008_p0 = pneg %p1007_p11 }
 0x1cf   : > { %p1013_p2 = pnand %p1012_p3, %p1008_p0 }
 0x1d1   : > { %1016 = shalt.err (!%p1013_p2)
}
 0x1d2   : > { %726 = dma.vmem_to_hbm [thread:$0]  (%p1377_p13), %s497_s30, 128, %s499_s18, %s477_s23  }
 0x1d3   : > { %s510_s16 = sshll.u32 %s1468_s26, 4  ;;  %s512_s24 = sshll.u32 %s508_s21, 4  ;;  %s511_s16 = int_to_ptr.vmem [resolvable:$true] %s510_s16  ;;  %s513_s24 = int_to_ptr.hbm [resolvable:$true] %s512_s24 }
 0x1d4   : > { %s482_s5 = scalar_lea.sflag [#allocation13], %s1433_s11  ;;  %s1031_s12 = sshra.s32 %s513_s24, 4  ;;  %s1032_s12 = int_to_ptr.hbm [resolvable:$true] %s1031_s12 }
 0x1d5   : > { %s1033_s22 = scalar_lea.hbm %s1032_s12, 8  ;;  %s1037_s17 = scalar_lea.hbm %s1671_s8, 16 }
 0x1d6   : > { %p1034_p9 = scmp.ne.s32.totalorder %s1032_s12, %s1033_s22  ;;  %p1038_p13 = scmp.lt.s32.totalorder %s1032_s12, %s1671_s8 }
 0x1d7   : > { %p1039_p10 = scmp.lt.s32.totalorder %s1037_s17, %s1033_s22 }
 0x1d8   : > { %p1035_p4 = pnand %p1034_p9, %p1388_p6 }
 0x1d9   : > { %p1040_p11 = por %p1039_p10, %p1038_p13 }
 0x1da   : > { %p1036_p7 = pneg %p1035_p4 }
 0x1dc   : > { %p1041_p0 = pnand %p1040_p11, %p1036_p7 }
 0x1de   : > { %1044 = shalt.err (!%p1041_p0)
}
 0x1df   : > { %727 = dma.vmem_to_hbm [thread:$0]  (%p1388_p6), %s511_s16, 128, %s513_s24, %s482_s5  }
 0x1e0 PF: > { %s1672_s11 = sld [smem:[#allocation19_spill]]  ;;  %p751_p5 = scmp.ge.s32.totalorder %s1175_s6, 2 }
 0x1e2   : > { %p744_p1 = pnand %p751_p5, %p1394_p8 }
 0x1e4   : > { %p745_p3 = pneg %p744_p1 }
 0x1e6   : > { %s524_s30 = sand.u32 1, %s1672_s11  }
 0x1e7   : > { %s525_s18 = scalar_lea.sflag [#allocation5], %s524_s30 }
 0x1e8   : > { %1114 = dma.done.wait (%p745_p3), %s525_s18, 128  }
 0x1e9   : > { %1116 = vsyncadd (%p745_p3), %s525_s18, 4294967168  ;;  %s1674_s21 = sld [smem:[#allocation23_spill]]  ;;  %p747_p2 = pnand %p751_p5, %p1401_p12 }
 0x1eb   : > { %p748_p9 = pneg %p747_p2 }
 0x1ef   : > { %s534_s27 = sand.u32 1, %s1674_s21  }
 0x1f0   : > { %s535_s4 = scalar_lea.sflag [#allocation13], %s534_s27 }
 0x1f1   : > { %1118 = dma.done.wait (%p748_p9), %s535_s4, 128  }
 0x1f2   : > { %1120 = vsyncadd (%p748_p9), %s535_s4, 4294967168  ;;  %s31_s6 = sadd.s32 1, %s1175_s6   ;;  %s1677_s28 = sld [smem:[#allocation20_spill]] }
 0x1f3   : > { %p1553_p6 = scmp.ge.s32.totalorder %s31_s6, 6   ;;  %s1678_s20 = sld [smem:[#allocation33_spill]] }
 0x1f4   : > { %s1679_s21 = sld [smem:[#allocation21_spill]]  ;;  %s1687_s18 = smov %s1127_s19 }
 0x1f5   : > { %s1680_s22 = sld [smem:[#allocation22_spill]]  ;;  %s1689_s24 = smov %s1151_s25 }
 0x1f6   : > { %s1681_s23 = sld [smem:[#allocation31_spill]]  ;;  %s1691_s27 = smov %s1167_s29 }
 0x1f7   : > { %s1682_s13 = sld [smem:[#allocation24_spill]] }
 0x1f8   : > { %s1683_s26 = sld [smem:[#allocation32_spill]]  ;;  %s1688_s19 = smov %s1677_s28 }
 0x1f9   : > { %s1684_s1 = sld [smem:[#allocation27_spill]] }
 0x1fa   : > { %s1685_s10 = sld [smem:[#allocation28_spill]] }
 0x1fb   : > { %s1686_s30 = sld [smem:[#allocation29_spill]] }
 0x1fc   :  { %30 = sbr.rel (!%p1553_p6) target bundleno = 22 (0x16), region = 143 }
 0x1fd   : > { %s1690_s25 = smov %s1682_s13 }
 0x1ff   : > { %s1692_s28 = smov %s1684_s1 }
 0x200   : > { %s1693_s29 = smov %s1685_s10 }
 0x201   :  { %541 = vsyncpa [#allocation4], 1 }
 0x202   :  { %543 = vsyncpa [#allocation4 + $0x1], 1 }
 0x203   :  { %544 = vsyncpa [#allocation7], 1 }
 0x204   :  { %546 = vsyncpa [#allocation7 + $0x1], 1 }
 0x205   :  { %547 = vsyncpa [#allocation10], 1 }
 0x206   :  { %549 = vsyncpa [#allocation10 + $0x1], 1 }
 0x207   :  { %550 = vsyncpa [#allocation5], 1 }
 0x208   :  { %552 = vsyncpa [#allocation5 + $0x1], 1 }
 0x209   :  { %553 = vsyncpa [#allocation13], 1 }
 0x20a   :  { %555 = vsyncpa [#allocation13 + $0x1], 1 }

</bundles_post_ra>
